<compile_context>
chip_gen: v7x
topology: tpu7x:2x2x1
jax: 0.10.0
libtpu: 0.0.40
codegen_flags: <defaults>
</compile_context>

<pallas_src>
import math

import jax
import jax.numpy as jnp
from jax.experimental import pallas as pl
from jax.experimental.pallas import tpu as pltpu


# ---------------------------------------------------------------------------
# DCT filter construction (matches MultiSpectralDCTLayer_sum.get_dct_filter_sum)
# ---------------------------------------------------------------------------
def _build_filter_1d(size, freq):
    pos = jnp.arange(size, dtype=jnp.float32)
    f = jnp.cos(math.pi * freq * (pos + 0.5) / size) / math.sqrt(size)
    if freq != 0:
        f = f * math.sqrt(2.0)
    return f


def make_dct_filter_sum(height, width, mapper_x, mapper_y):
    assert len(mapper_x) == len(mapper_y)
    w = jnp.zeros((height, width), dtype=jnp.float32)
    for u_x, v_y in zip(mapper_x, mapper_y):
        w = w + jnp.outer(_build_filter_1d(height, u_x),
                          _build_filter_1d(width, v_y))
    return w  # (H, W), float32


# ---------------------------------------------------------------------------
# Kernels
# ---------------------------------------------------------------------------
def _dct_sum_kernel_mxu(x_ref, w_ref, o_ref, acc_ref):
    """MXU matvec path (bf16/fp16 inputs).

    x_ref: (bt, tk)   w_ref: (tk, 1)   o_ref: (bt, 1)   acc_ref: (bt, 1) f32
    Products are formed at full precision on the MXU and accumulated in f32,
    so the reduction stays off the XLU lane-reduce slot and no full-block f32
    temporary is materialized.
    """
    @pl.when(pl.program_id(1) == 0)
    def _():
        acc_ref[...] = jnp.zeros_like(acc_ref)

    acc_ref[...] += jnp.dot(x_ref[...], w_ref[...],
                            preferred_element_type=jnp.float32)

    @pl.when(pl.program_id(1) == pl.num_programs(1) - 1)
    def _():
        o_ref[...] = acc_ref[...].astype(o_ref.dtype)


def _dct_sum_kernel_vpu(x_ref, w_ref, o_ref, acc_ref):
    """Exact VPU multiply + f32 lane-reduce path (f32 inputs, HBM-bound).

    x_ref: (bt, tk)   w_ref: (1, tk)   o_ref: (bt, 1)   acc_ref: (bt, 1) f32
    """
    @pl.when(pl.program_id(1) == 0)
    def _():
        acc_ref[...] = jnp.zeros_like(acc_ref)

    acc_ref[...] += jnp.sum(x_ref[...] * w_ref[...], axis=-1, keepdims=True,
                            dtype=jnp.float32)

    @pl.when(pl.program_id(1) == pl.num_programs(1) - 1)
    def _():
        o_ref[...] = acc_ref[...].astype(o_ref.dtype)


# ---------------------------------------------------------------------------
# Tiling / VMEM budgeting (generation-aware)
# ---------------------------------------------------------------------------
def _vmem_capacity_bytes():
    try:
        return int(pltpu.get_tpu_info().vmem_capacity_bytes)
    except Exception:
        return 64 << 20  # conservative fallback (v7x per-TensorCore VMEM)


def _choose_tiles(n_rows, hw, itemsize):
    """Pick (row_tile, k_tile) for the (n_rows, hw) -> (n_rows, 1) reduction."""
    vmem = _vmem_capacity_bytes()
    per_block_cap = max(vmem // 8, 1 << 20)          # soft per-buffer cap
    sub = 8 if itemsize >= 4 else (16 if itemsize == 2 else 32)

    # Default: keep the whole reduction axis in one block (the common case).
    tk = hw
    if sub * hw * itemsize > per_block_cap:
        # Split HW into 128-lane-aligned chunks that divide it exactly so that
        # padded garbage can never enter the accumulation.
        tk = max(((per_block_cap // (sub * itemsize)) // 128) * 128, 128)
        while hw % tk != 0 and tk > 128:
            tk -= 128
        if hw % tk != 0:
            # TODO(synk): mask the ragged tail of the reduction axis; for now
            # fall back to one full-HW block per row tile.
            tk = hw

    row_block_bytes = tk * itemsize
    # Target >= 8 grid steps over rows (pipelining + v7x megacore) with <= 8
    # MiB blocks (2-8 MiB already hits ~85%+ of HBM roofline), never above cap.
    target = max((n_rows * row_block_bytes) // 8, sub * row_block_bytes)
    block_bytes = min(per_block_cap,
                      max(min(target, 8 << 20), sub * row_block_bytes))
    bt = max(block_bytes // row_block_bytes, 1)
    bt = max((bt // sub) * sub, min(sub, n_rows))    # sublane-aligned
    bt = min(bt, n_rows)
    return bt, tk


# ---------------------------------------------------------------------------
# Wrapper
# ---------------------------------------------------------------------------
def multispectral_dct_sum(x_nchw, weight_hw):
    """x_nchw: (B, C, H, W), weight_hw: (H, W) float32 -> (B, C) in x's dtype."""
    B, C, H, W = x_nchw.shape
    assert weight_hw.shape == (H, W)
    n_rows, hw = B * C, H * W

    # TODO(synk): for the 7x7 FcaNet config (HW=49) a channels-last (B, HW, C)
    # layout (free when the producer is NHWC) would give lane-dense vregs and
    # unmasked output stores; not applicable to an NCHW input without an extra
    # HBM transpose pass.

    x2d = x_nchw.reshape(n_rows, hw)                 # contiguous: layout no-op
    itemsize = jnp.dtype(x_nchw.dtype).itemsize
    bt, tk = _choose_tiles(n_rows, hw, itemsize)
    grid = (pl.cdiv(n_rows, bt), pl.cdiv(hw, tk))

    use_mxu = itemsize < 4   # bf16/fp16: stream the reduction through the MXU
    if use_mxu:
        kernel = _dct_sum_kernel_mxu
        w_arr = weight_hw.reshape(hw, 1).astype(x_nchw.dtype)
        w_spec = pl.BlockSpec((tk, 1), lambda i, k: (k, 0))
    else:
        kernel = _dct_sum_kernel_vpu
        w_arr = weight_hw.reshape(1, hw).astype(jnp.float32)
        w_spec = pl.BlockSpec((1, tk), lambda i, k: (0, k))

    vmem_limit = int(_vmem_capacity_bytes() * 0.7)

    out = pl.pallas_call(
        kernel,
        out_shape=jax.ShapeDtypeStruct((n_rows, 1), x_nchw.dtype),
        grid_spec=pltpu.PrefetchScalarGridSpec(
            num_scalar_prefetch=0,
            grid=grid,
            in_specs=[
                pl.BlockSpec((bt, tk), lambda i, k: (i, k)),
                w_spec,
            ],
            out_specs=pl.BlockSpec((bt, 1), lambda i, k: (i, 0)),
            scratch_shapes=[pltpu.VMEM((bt, 1), jnp.float32)],
        ),
        compiler_params=pltpu.CompilerParams(
            dimension_semantics=("parallel", "arbitrary"),
            vmem_limit_bytes=vmem_limit,
        ),
    )(x2d, w_arr)

    return out.reshape(B, C)


# ---------------------------------------------------------------------------
# Pure-JAX reference (matches the PyTorch forward, evaluated in f32)
# ---------------------------------------------------------------------------
def multispectral_dct_sum_ref(x_nchw, weight_hw):
    x = x_nchw.astype(jnp.float32)
    w = weight_hw.astype(jnp.float32)
    return jnp.sum(x * w[None, None, :, :], axis=(2, 3))


if __name__ == "__main__":
    # Module config: height=width=16, 4 frequency pairs, channel=16 (divisible
    # by num_freq, as the PyTorch module asserts).
    B, C, Hs, Ws = 2, 16, 16, 16
    mapper_x = [0, 0, 6, 0]
    mapper_y = [0, 1, 0, 5]
    assert C % len(mapper_x) == 0

    key = jax.random.PRNGKey(0)
    x = jax.random.normal(key, (B, C, Hs, Ws), dtype=jnp.float32)
    weight = make_dct_filter_sum(Hs, Ws, mapper_x, mapper_y)     # (H, W) f32

    # f32 path (exact VPU multiply + f32 reduce).
    out = jax.block_until_ready(multispectral_dct_sum(x, weight))
    ref = multispectral_dct_sum_ref(x, weight)
    assert out.shape == (B, C)
    assert jnp.allclose(out, ref, atol=1e-4, rtol=1e-5), "f32 mismatch vs reference"

    # bf16 path (MXU matvec, f32 accumulation); compare against an f32
    # reference evaluated on the same bf16-rounded input and filter.
    x_bf16 = x.astype(jnp.bfloat16)
    out_bf = jax.block_until_ready(multispectral_dct_sum(x_bf16, weight))
    w_bf = weight.astype(jnp.bfloat16).astype(jnp.float32)
    ref_bf = jnp.sum(x_bf16.astype(jnp.float32) * w_bf[None, None, :, :],
                     axis=(2, 3))
    assert out_bf.shape == (B, C)
    assert jnp.allclose(out_bf.astype(jnp.float32), ref_bf, atol=3e-2, rtol=3e-2), \
        "bf16 mismatch vs reference"

    print("KERNEL_OK")
</pallas_src>

<mosaic_0001>
module attributes {stable_mosaic.version = 11 : i64} {
  func.func @_dct_sum_kernel_vpu(%arg0: i32, %arg1: i32, %arg2: memref<8x256xf32, #tpu.memory_space<vmem>>, %arg3: memref<1x256xf32, #tpu.memory_space<vmem>>, %arg4: memref<8x1xf32, #tpu.memory_space<vmem>>, %arg5: memref<8x1xf32, #tpu.memory_space<vmem>>) attributes {dimension_semantics = [#tpu.dimension_semantics<parallel>, #tpu.dimension_semantics<arbitrary>], iteration_bounds = array<i64: 4, 1>, scalar_prefetch = 0 : i64, scratch_operands = 1 : i64, tpu.core_type = #tpu.core_type<tc>, window_params = [{transform_indices = @transform_0, window_bounds = array<i64: 8, 256>}, {transform_indices = @transform_1, window_bounds = array<i64: 1, 256>}, {transform_indices = @transform_2, window_bounds = array<i64: 8, 1>}]} {
    %c0_i32 = arith.constant 0 : i32
    %0 = arith.cmpi eq, %arg1, %c0_i32 : i32
    %1 = arith.extui %0 : i1 to i32
    %c0_i32_0 = arith.constant 0 : i32
    %2 = arith.cmpi ne, %1, %c0_i32_0 : i32
    scf.if %2 {
      %cst_10 = arith.constant 0.000000e+00 : f32
      %15 = vector.broadcast %cst_10 : f32 to vector<8x1xf32>
      %c0_11 = arith.constant 0 : index
      %c0_12 = arith.constant 0 : index
      %16 = vector.load %arg5[%c0_11, %c0_12] : memref<8x1xf32, #tpu.memory_space<vmem>>, vector<8x1xf32>
      tpu.vector_store %arg5[%c0_11, %c0_12], %15 {strides = array<i32>} : memref<8x1xf32, #tpu.memory_space<vmem>>, vector<8x1xf32>,
    } else {
    }
    %c0 = arith.constant 0 : index
    %c0_1 = arith.constant 0 : index
    %3 = vector.load %arg5[%c0, %c0_1] : memref<8x1xf32, #tpu.memory_space<vmem>>, vector<8x1xf32>
    %c0_2 = arith.constant 0 : index
    %c0_3 = arith.constant 0 : index
    %4 = vector.load %arg2[%c0_2, %c0_3] : memref<8x256xf32, #tpu.memory_space<vmem>>, vector<8x256xf32>
    %c0_4 = arith.constant 0 : index
    %c0_5 = arith.constant 0 : index
    %5 = vector.load %arg3[%c0_4, %c0_5] : memref<1x256xf32, #tpu.memory_space<vmem>>, vector<1x256xf32>
    %6 = vector.broadcast %5 : vector<1x256xf32> to vector<8x256xf32>
    %7 = arith.mulf %4, %6 : vector<8x256xf32>
    %cst = arith.constant dense<0.000000e+00> : vector<8xf32>
    %8 = vector.multi_reduction <add>, %7, %cst [1] : vector<8x256xf32> to vector<8xf32>
    %9 = vector.shape_cast %8 : vector<8xf32> to vector<8x1xf32>
    %10 = arith.addf %3, %9 : vector<8x1xf32>
    %c0_6 = arith.constant 0 : index
    %c0_7 = arith.constant 0 : index
    %11 = vector.load %arg5[%c0_6, %c0_7] : memref<8x1xf32, #tpu.memory_space<vmem>>, vector<8x1xf32>
    tpu.vector_store %arg5[%c0_6, %c0_7], %10 {strides = array<i32>} : memref<8x1xf32, #tpu.memory_space<vmem>>, vector<8x1xf32>,
    %c0_i32_8 = arith.constant 0 : i32
    %12 = arith.cmpi eq, %arg1, %c0_i32_8 : i32
    %13 = arith.extui %12 : i1 to i32
    %c0_i32_9 = arith.constant 0 : i32
    %14 = arith.cmpi ne, %13, %c0_i32_9 : i32
    scf.if %14 {
      %c0_10 = arith.constant 0 : index
      %c0_11 = arith.constant 0 : index
      %15 = vector.load %arg5[%c0_10, %c0_11] : memref<8x1xf32, #tpu.memory_space<vmem>>, vector<8x1xf32>
      %c0_12 = arith.constant 0 : index
      %c0_13 = arith.constant 0 : index
      %16 = vector.load %arg4[%c0_12, %c0_13] : memref<8x1xf32, #tpu.memory_space<vmem>>, vector<8x1xf32>
      tpu.vector_store %arg4[%c0_12, %c0_13], %15 {strides = array<i32>} : memref<8x1xf32, #tpu.memory_space<vmem>>, vector<8x1xf32>,
    } else {
    }
    return
  }
  func.func @transform_0(%arg0: i32, %arg1: i32) -> (i32, i32) {
    %c0_i32 = arith.constant 0 : i32
    return %arg0, %arg1 : i32, i32
  }
  func.func @transform_1(%arg0: i32, %arg1: i32) -> (i32, i32) {
    %c0_i32 = arith.constant 0 : i32
    %c0_i32_0 = arith.constant 0 : i32
    return %c0_i32, %arg1 : i32, i32
  }
  func.func @transform_2(%arg0: i32, %arg1: i32) -> (i32, i32) {
    %c0_i32 = arith.constant 0 : i32
    %c0_i32_0 = arith.constant 0 : i32
    return %arg0, %c0_i32 : i32, i32
  }
}

</mosaic_0001>

<bundles_post_ra>
// kernel: tpu_custom_call.1
= control target key start
LH: loop header
LB: loop body
LE: loop exit
PB: predicated region body
PF: predicated region fallthrough
CT: control target
= control target key end

     0   :  { %7 = vsyncpa [#allocation4], 0  ;;  %s618_s0 = inlined_call_operand.hbm [shape: f32[32,256], index: 0, kind: input, shape index: {}]   ;;  %s619_s1 = inlined_call_operand.vmem [shape: f32[1,256], index: 1, kind: input, shape index: {}]   ;;  %s620_s2 = inlined_call_operand.vmem [shape: f32[32,1], index: 2, kind: output, shape index: {}]  }
   0x1   :  { %9 = vsyncpa [#allocation4 + $0x1], 0  ;;  %s487_s9 = smov 0   ;;  %s489_s10 = smov 0  }
   0x2   :  { %s491_s11 = smov 0   ;;  %s493_s12 = smov 0  }
   0x3   :  { %s495_s13 = smov 0   ;;  %s497_s14 = smov 0  }
   0x4 LB: > { %s318_s15 = sadd.s32 4294967295, %s468_s14   ;;  %s27_s16 = sadd.s32 1, %s464_s13  ;;  %s468_s14 = sphi %s497_s14, %s15_s14   ;;  %s464_s13 = sphi %s495_s13, %s630_s13   ;;  %s460_s12 = sphi %s493_s12, %s629_s12   ;;  %s456_s11 = sphi %s491_s11, %s628_s11   ;;  %s452_s10 = sphi %s489_s10, %s627_s10   ;;  %s448_s9 = sphi %s487_s9, %s626_s9  }
   0x5   : > { %p29_p0 = scmp.ge.s32.totalorder %s27_s16, 4  ;;  %s36_s17 = sadd.s32 1, %s456_s11 }
   0x6   : > { %p43_p1 = scmp.ne.s32.totalorder %s456_s11, %s452_s10  ;;  %p44_p2 = scmp.eq.s32.totalorder %s468_s14, 0 }
   0x7   : > { %s632_s16 = smov (%p29_p0, %s27_s16), 0  ;;  %p49_p4 = scmp.ne.s32.totalorder %s452_s10, %s448_s9 }
   0x8   : > { %p523_p3 = por %p44_p2, %p43_p1  ;;  %s31_s19 = ssub.s32 %s464_s13, %s632_s16 }
   0x9   : > { %p50_p5 = scmp.eq.s32.totalorder %s318_s15, 0  ;;  %p34_p6 = scmp.eq.s32.totalorder %s31_s19, 0 }
   0xa   : > { %p338_p8 = scmp.lt.s32.totalorder %s468_s14, 4  ;;  %s133_s22 = sand.u32 1, %s456_s11  }
   0xb   : > { %p530_p7 = por %p50_p5, %p49_p4  ;;  %s331_s23 = sshll.u32 %s464_s13, 8 }
   0xc   : > { %s536_s21 = scalar_select %p34_p6, %s456_s11, %s36_s17  }
   0xd   : > { %s323_s24 = sshll.u32 %s133_s22, 4  ;;  %s543_s27 = scalar_lea.hbm %s618_s0, %s331_s23 }
   0xe   : > { %s137_s28 = scalar_lea.vmem [#allocation3], %s323_s24  ;;  %p547_p9 = pnand %p338_p8, %p523_p3 }
   0xf   : > { %s147_s29 = sshll.u32 %s137_s28, 4  ;;  %s134_s3 = scalar_lea.sflag [#allocation4], %s133_s22  ;;  %s551_s29 = int_to_ptr.vmem [resolvable:$true] %s147_s29 }
  0x10   : > { %s388_s4 = scalar_lea.hbm %s543_s27, 256  ;;  %p390_p13 = pneg %p547_p9 }
  0x11   : > { %p389_p12 = scmp.ne.s32.totalorder %s543_s27, %s388_s4  ;;  %s393_s7 = scalar_lea.hbm %s618_s0, 1024 }
  0x12   : > { %p394_p2 = scmp.lt.u32.totalorder %s543_s27, %s618_s0  ;;  %p395_p3 = scmp.lt.u32.totalorder %s393_s7, %s388_s4 }
  0x13   : > { %p391_p0 = pnand %p390_p13, %p389_p12  ;;  %p397_p5 = scmp.lt.u32.totalorder %s388_s4, %s543_s27 }
  0x14   : > { %p396_p4 = por %p395_p3, %p394_p2 }
  0x15   : > { %p392_p1 = pneg %p391_p0 }
  0x16   : > { %p398_p6 = por %p397_p5, %p396_p4 }
  0x18   : > { %p399_p8 = pnand %p398_p6, %p392_p1 }
  0x1a   : > { %402 = shalt.err (!%p399_p8)
}
  0x1b   : > { %s403_s15 = scalar_lea.vmem %s551_s29, 256  ;;  %s470_s17 = smov [#allocation3]  }
  0x1c   : > { %p404_p12 = scmp.ne.s32.totalorder %s551_s29, %s403_s15  ;;  %s408_s18 = sshll.u32 %s470_s17, 4  ;;  %s409_s18 = int_to_ptr.vmem [resolvable:$false] %s408_s18 }
  0x1d   : > { %s410_s19 = scalar_lea.vmem %s409_s18, 512  ;;  %p411_p11 = scmp.lt.s32.totalorder %s551_s29, %s409_s18 }
  0x1e   : > { %p406_p0 = pnand %p404_p12, %p390_p13  ;;  %p412_p2 = scmp.lt.s32.totalorder %s410_s19, %s403_s15 }
  0x20   : > { %p407_p10 = pneg %p406_p0  ;;  %p413_p3 = por %p412_p2, %p411_p11 }
  0x22   : > { %p414_p4 = pnand %p413_p3, %p407_p10 }
  0x24   : > { %417 = shalt.err (!%p414_p4)
}
  0x25   : > { %337 = dma.hbm_to_vmem [thread:$0]  (!%p547_p9), %s543_s27, 256, %s551_s29, %s134_s3  }
  0x26   : > { %p624_p1 = scmp.lt.s32.totalorder %s468_s14, 5  ;;  %p625_p5 = scmp.ge.s32.totalorder %s468_s14, 1 }
  0x28   : > { %p153_p13 = pnand %p625_p5, %p624_p1 }
  0x29   : > { %s158_s22 = sand.u32 (!%p153_p13), 1, %s452_s10  }
  0x2a   : > { %156 = sbr.rel (%p153_p13) target bundleno = 215 (0xd7), region = 28  ;;  %s327_s23 = sshll.u32 (!%p153_p13), %s158_s22, 4 }
  0x2b   : > { %s159_s24 = scalar_lea.sflag (!%p153_p13), [#allocation4], %s158_s22  ;;  %s162_s25 = scalar_lea.vmem (!%p153_p13), [#allocation3], %s327_s23 }
  0x31   : > { %443 = dma.done.wait (%p530_p7), %s159_s24, 256  }
  0x32   : > { %445 = vsyncadd (%p530_p7), %s159_s24, 4294967040  ;;  %v207_v0 = vlaneseq  ;;  %vm200_vm0 = vcmask 7168   ;;  %v471_v1 = vmov 0.0   ;;  %v203_v5 = vld [vmem:[%s162_s25] sm:$0xff]  ;;  %v204_v6 = vld [vmem:[%s162_s25 + $0x8] sm:$0xff]  ;;  %p192_p7 = scmp.lt.s32.totalorder %s460_s12, 3 }
  0x33   : > { %201 = vst.msk [vmem:[#allocation2] sm:$0xff] %vm200_vm0, %v471_v1  ;;  %v205_v7 = vld [vmem:[%s619_s1] sm:$0x3] }
  0x34   : > { %v208_v2 = vshrl.u32 %v207_v0, 7  ;;  %s634_s12 = smov (!%p192_p7, %s460_s12), 3 }
  0x35   : > { %s328_s20 = sshll.u32 %s634_s12, 3 }
  0x36   : > { %v209_v3 = vsub.s32 0, %v208_v2  ;;  %v213_v4 = vsub.s32 1, %v208_v2  ;;  %s195_s30 = scalar_lea.vmem %s620_s2, %s328_s20 }
  0x38   : > { %v210_v8 = vrot.slane %v205_v7, %v209_v3  ;;  %v214_v9 = vrot.slane %v205_v7, %v213_v4 }
  0x3a   : > { %v217_v10 = vmul.f32 %v210_v8, %v203_v5  ;;  %v218_v11 = vmul.f32 %v214_v9, %v204_v6  ;;  %v202_v13 = vld [vmem:[#allocation2] sm:$0xff] }
  0x3c   : > { %v219_v12 = vadd.f32 %v218_v11, %v217_v10 }
  0x3e   : > { %220 = vadd.xlane.f32.xlu0 %v219_v12 }
  0xcb   : > { %v221_v14 = vpop.xlane.xlu0 %220 }
  0xcc   : > { %v222_v15 = vadd.f32 %v221_v14, %v202_v13 }
  0xce   : > { %224 = vst.msk [vmem:[#allocation2] sm:$0xff] %vm200_vm0, %v222_v15 }
  0xd5   : > { %v228_v16 = vld [vmem:[#allocation2] sm:$0xff] }
  0xd6   : > { %229 = vst.msk [vmem:[%s195_s30] sm:$0xff] %vm200_vm0, %v228_v16 }
  0xd7 PF: > { %s15_s14 = sadd.s32 1, %s468_s14   ;;  %s626_s9 = smov %s452_s10 }
  0xd8   : > { %p12_p9 = scmp.ge.s32.totalorder %s15_s14, 6   ;;  %s627_s10 = smov %s456_s11 }
  0xd9   : > { %s628_s11 = smov %s536_s21  ;;  %s629_s12 = smov %s464_s13 }
  0xda   : > { %s630_s13 = smov %s632_s16  ;;  %14 = sbr.rel (!%p12_p9) target bundleno = 4 (0x4), region = 79 }
  0xe1   :  { %249 = vsyncpa [#allocation4], 1 }
  0xe2   :  { %251 = vsyncpa [#allocation4 + $0x1], 1 }

</bundles_post_ra>
